<compile_context>
chip_gen: v6e
topology: v6e:2x2x1
jax: 0.10.0
libtpu: 0.0.40
codegen_flags: <defaults>
</compile_context>

<pallas_src>
import functools

import jax
import jax.numpy as jnp
from jax.experimental import pallas as pl
from jax.experimental.pallas import tpu as pltpu


def _round_up(x, m):
    return ((x + m - 1) // m) * m


# ----------------------------------------------------------------------------
# Fused kernel: for one row-tile of x, run the whole MLP
#   h = x;  for each layer:  h = act( LN( h @ W + b ) )
# Weights / packed per-feature params live fully in VMEM (they are tiny),
# the intermediate stays in registers/VMEM, only the final tile is stored.
# ----------------------------------------------------------------------------
def fused_mlp_kernel(*refs, layer_cfgs, eps):
    x_ref = refs[0]
    o_ref = refs[-1]
    param_refs = refs[1:-1]          # interleaved: (w_0, p_0, w_1, p_1, ...)

    h = x_ref[...]                                # (tm, d_in), dtype of x

    for li, (use_ln, act) in enumerate(layer_cfgs):
        w_ref = param_refs[2 * li]                # (d_in_l, d_out_l), mxu dtype
        p_ref = param_refs[2 * li + 1]            # (rows, d_out_l), f32:
                                                  #   [bias; (gamma; beta); (alpha)]
        w = w_ref[...]
        # MXU: bf16 x bf16 -> f32 accumulate.
        y = jnp.dot(h.astype(w.dtype), w, preferred_element_type=jnp.float32)
        y = y + p_ref[0:1, :]                                 # bias (f32)

        row = 1
        if use_ln:
            # One-pass LayerNorm stats; row sums on the (idle) MXU instead of
            # XLU lane reductions.  var clamped >= 0 against cancellation.
            d = y.shape[-1]
            ones_col = jnp.ones((d, 1), jnp.float32)
            s1 = jnp.dot(y, ones_col, preferred_element_type=jnp.float32)
            s2 = jnp.dot(y * y, ones_col, preferred_element_type=jnp.float32)
            inv_d = 1.0 / d
            mean = s1 * inv_d
            var = jnp.maximum(s2 * inv_d - mean * mean, 0.0)
            y = (y - mean) * jax.lax.rsqrt(var + eps)
            y = y * p_ref[row:row + 1, :] + p_ref[row + 1:row + 2, :]
            row += 2

        if act == "prelu":
            # MyPReLU with num_parameters=1: shared scalar alpha.
            alpha = p_ref[row:row + 1, 0:1]                   # (1,1) f32
            y = jnp.where(y >= 0.0, y, alpha * y)
        elif act == "relu":
            y = jnp.maximum(y, 0.0)
        # act == 'none' -> identity.  Dropout(p=0.0) / eval mode -> identity.

        h = y

    # Any ragged/padded rows in the last grid block only ever influence their
    # own row (matmul + per-row LN), and their stores are clipped by Pallas,
    # so garbage in the padding cannot corrupt real outputs.
    o_ref[...] = h.astype(o_ref.dtype)


# ----------------------------------------------------------------------------
# Wrapper: builds BlockSpecs, packs per-layer params, picks the row tile.
# ----------------------------------------------------------------------------
def mymlp_forward(x, params, *, activation, output_activation, ln, output_ln,
                  bn=False, output_bn=False, tm=2048, eps=1e-5,
                  mxu_dtype=jnp.bfloat16, min_rows_for_core_split=512):
    # TODO(synk): BatchNorm1d (bn/output_bn) not implemented; config keeps False.
    assert not bn and not output_bn

    n, d_in = x.shape
    n_layers = len(params)
    d_out = params[-1]["w"].shape[1]

    layer_cfgs = []
    layer_inputs = []
    in_specs = [None]                 # slot 0 filled with the x spec below
    for li, p in enumerate(params):
        last = (li == n_layers - 1)
        act = output_activation if last else activation
        act = "none" if act is None else act
        use_ln = bool(output_ln if last else ln)
        layer_cfgs.append((use_ln, act))

        di, do = p["w"].shape
        w = p["w"].astype(mxu_dtype)                          # MXU operand
        rows = [p["b"].reshape(1, do)]                        # bias always
        if use_ln:
            rows += [p["gamma"].reshape(1, do), p["beta"].reshape(1, do)]
        if act == "prelu":
            rows += [jnp.broadcast_to(p["alpha"].reshape(1, 1), (1, do))]
        packed = jnp.concatenate(rows, axis=0).astype(jnp.float32)
        nrows = packed.shape[0]

        layer_inputs += [w, packed]
        in_specs += [
            pl.BlockSpec((di, do), lambda i: (0, 0)),     # weight: resident
            pl.BlockSpec((nrows, do), lambda i: (0, 0)),  # packed params: resident
        ]

    # Row tiling:
    #  * tiny n      -> one full block (rounded to a sublane multiple of 8)
    #  * moderate+ n -> cap the tile so there are always >= 2 grid steps
    #                   (lets v7x shard the 'parallel' axis across both TCs)
    #    while keeping tiles as large as possible (amortize ~0.35us/step).
    # No host-side pad/slice: grid = cdiv(n, tm_eff), Pallas clips the ragged
    # last block.
    if n <= min_rows_for_core_split:
        tm_eff = _round_up(n, 8)
    else:
        n_steps = max(2, pl.cdiv(n, tm))
        tm_eff = _round_up(pl.cdiv(n, n_steps), 8)
    grid = (pl.cdiv(n, tm_eff),)

    in_specs[0] = pl.BlockSpec((tm_eff, d_in), lambda i: (i, 0))
    out_spec = pl.BlockSpec((tm_eff, d_out), lambda i: (i, 0))

    kernel = functools.partial(fused_mlp_kernel,
                               layer_cfgs=tuple(layer_cfgs), eps=eps)

    out = pl.pallas_call(
        kernel,
        out_shape=jax.ShapeDtypeStruct((n, d_out), x.dtype),
        grid_spec=pltpu.PrefetchScalarGridSpec(
            num_scalar_prefetch=0,
            grid=grid,
            in_specs=in_specs,
            out_specs=out_spec,
        ),
        compiler_params=pltpu.CompilerParams(
            dimension_semantics=("parallel",)),   # v7x: shard rows across TCs
    )(x, *layer_inputs)

    return out


# ----------------------------------------------------------------------------
# Deterministic parameter construction (matches the PyTorch init).
# ----------------------------------------------------------------------------
def xavier_uniform(key, fan_in, fan_out):
    # nn.init.xavier_uniform_ on a (fan_out, fan_in) Linear weight, stored
    # transposed as (fan_in, fan_out) so the hot path is row-major matmul.
    bound = (6.0 / (fan_in + fan_out)) ** 0.5
    return jax.random.uniform(key, (fan_in, fan_out), jnp.float32,
                              minval=-bound, maxval=bound)


def build_mymlp_params(key, in_channels, units_list):
    dims = [in_channels] + list(units_list)
    params = []
    for i in range(len(dims) - 1):
        key, wk = jax.random.split(key)
        params.append(dict(
            w=xavier_uniform(wk, dims[i], dims[i + 1]),       # MyLinear init
            b=jnp.zeros((1, dims[i + 1]), jnp.float32),       # zeros_ bias
            gamma=jnp.ones((1, dims[i + 1]), jnp.float32),    # LayerNorm defaults
            beta=jnp.zeros((1, dims[i + 1]), jnp.float32),
            alpha=jnp.full((1, 1), 0.25, jnp.float32),        # MyPReLU init=0.25
        ))
    return params


if __name__ == "__main__":
    key = jax.random.PRNGKey(0)
    key, xk, pk = jax.random.split(key, 3)

    in_channels = 32
    units_list = [64, 32]
    N = 8

    x = jax.random.normal(xk, (N, in_channels), jnp.float32)
    params = build_mymlp_params(pk, in_channels, units_list)

    out = mymlp_forward(
        x, params,
        activation="prelu", output_activation="none",
        ln=True, output_ln=False,
    )
    out = jax.block_until_ready(out)
    assert out.shape == (N, units_list[-1]) and out.dtype == jnp.float32
    assert bool(jnp.all(jnp.isfinite(out)))

    print("KERNEL_OK")
</pallas_src>

<mosaic_0001>
module attributes {stable_mosaic.version = 11 : i64} {
  func.func @fused_mlp_kernel(%arg0: i32, %arg1: memref<8x32xf32, #tpu.memory_space<vmem>>, %arg2: memref<32x64xbf16, #tpu.memory_space<vmem>>, %arg3: memref<4x64xf32, #tpu.memory_space<vmem>>, %arg4: memref<64x32xbf16, #tpu.memory_space<vmem>>, %arg5: memref<1x32xf32, #tpu.memory_space<vmem>>, %arg6: memref<8x32xf32, #tpu.memory_space<vmem>>) attributes {dimension_semantics = [#tpu.dimension_semantics<parallel>], iteration_bounds = array<i64: 1>, scalar_prefetch = 0 : i64, scratch_operands = 0 : i64, tpu.core_type = #tpu.core_type<tc>, window_params = [{transform_indices = @transform_0, window_bounds = array<i64: 8, 32>}, {pipeline_mode = #tpu.pipeline_mode<synchronous>, transform_indices = @transform_1, window_bounds = array<i64: 32, 64>}, {pipeline_mode = #tpu.pipeline_mode<synchronous>, transform_indices = @transform_2, window_bounds = array<i64: 4, 64>}, {pipeline_mode = #tpu.pipeline_mode<synchronous>, transform_indices = @transform_3, window_bounds = array<i64: 64, 32>}, {pipeline_mode = #tpu.pipeline_mode<synchronous>, transform_indices = @transform_4, window_bounds = array<i64: 1, 32>}, {transform_indices = @transform_5, window_bounds = array<i64: 8, 32>}]} {
    %c0 = arith.constant 0 : index
    %c0_0 = arith.constant 0 : index
    %0 = vector.load %arg1[%c0, %c0_0] : memref<8x32xf32, #tpu.memory_space<vmem>>, vector<8x32xf32>
    %c0_1 = arith.constant 0 : index
    %c0_2 = arith.constant 0 : index
    %1 = vector.load %arg2[%c0_1, %c0_2] : memref<32x64xbf16, #tpu.memory_space<vmem>>, vector<32x64xbf16>
    %2 = arith.truncf %0 : vector<8x32xf32> to vector<8x32xbf16>
    %cst = arith.constant dense<0.000000e+00> : vector<8x64xf32>
    %3 = tpu.matmul %2, %1, %cst {dimension_numbers = #tpu.dot_dimension_numbers<[1], [0], [0], [1], [0, 0, 1, 1], [], []>} : vector<8x32xbf16>, vector<32x64xbf16>, vector<8x64xf32> -> vector<8x64xf32>
    %c0_3 = arith.constant 0 : index
    %c0_4 = arith.constant 0 : index
    %4 = vector.load %arg3[%c0_3, %c0_4] : memref<4x64xf32, #tpu.memory_space<vmem>>, vector<1x64xf32>
    %5 = vector.broadcast %4 : vector<1x64xf32> to vector<8x64xf32>
    %6 = arith.addf %3, %5 : vector<8x64xf32>
    %cst_5 = arith.constant 1.000000e+00 : f32
    %7 = vector.broadcast %cst_5 : f32 to vector<64x1xf32>
    %cst_6 = arith.constant dense<0.000000e+00> : vector<8x1xf32>
    %8 = tpu.matmul %6, %7, %cst_6 {dimension_numbers = #tpu.dot_dimension_numbers<[1], [0], [0], [1], [0, 0, 1, 1], [], []>} : vector<8x64xf32>, vector<64x1xf32>, vector<8x1xf32> -> vector<8x1xf32>
    %9 = arith.mulf %6, %6 : vector<8x64xf32>
    %cst_7 = arith.constant dense<0.000000e+00> : vector<8x1xf32>
    %10 = tpu.matmul %9, %7, %cst_7 {dimension_numbers = #tpu.dot_dimension_numbers<[1], [0], [0], [1], [0, 0, 1, 1], [], []>} : vector<8x64xf32>, vector<64x1xf32>, vector<8x1xf32> -> vector<8x1xf32>
    %cst_8 = arith.constant 1.562500e-02 : f32
    %11 = vector.broadcast %cst_8 : f32 to vector<8x1xf32>
    %12 = arith.mulf %8, %11 : vector<8x1xf32>
    %cst_9 = arith.constant 1.562500e-02 : f32
    %13 = vector.broadcast %cst_9 : f32 to vector<8x1xf32>
    %14 = arith.mulf %10, %13 : vector<8x1xf32>
    %15 = arith.mulf %12, %12 : vector<8x1xf32>
    %16 = arith.subf %14, %15 : vector<8x1xf32>
    %cst_10 = arith.constant 0.000000e+00 : f32
    %17 = vector.broadcast %cst_10 : f32 to vector<8x1xf32>
    %18 = arith.maximumf %16, %17 : vector<8x1xf32>
    %19 = vector.broadcast %12 : vector<8x1xf32> to vector<8x64xf32>
    %20 = arith.subf %6, %19 : vector<8x64xf32>
    %cst_11 = arith.constant 9.99999974E-6 : f32
    %21 = vector.broadcast %cst_11 : f32 to vector<8x1xf32>
    %22 = arith.addf %18, %21 : vector<8x1xf32>
    %23 = math.rsqrt %22 : vector<8x1xf32>
    %24 = vector.broadcast %23 : vector<8x1xf32> to vector<8x64xf32>
    %25 = arith.mulf %20, %24 : vector<8x64xf32>
    %c1 = arith.constant 1 : index
    %c0_12 = arith.constant 0 : index
    %26 = vector.load %arg3[%c1, %c0_12] : memref<4x64xf32, #tpu.memory_space<vmem>>, vector<1x64xf32>
    %27 = vector.broadcast %26 : vector<1x64xf32> to vector<8x64xf32>
    %28 = arith.mulf %25, %27 : vector<8x64xf32>
    %c2 = arith.constant 2 : index
    %c0_13 = arith.constant 0 : index
    %29 = vector.load %arg3[%c2, %c0_13] : memref<4x64xf32, #tpu.memory_space<vmem>>, vector<1x64xf32>
    %30 = vector.broadcast %29 : vector<1x64xf32> to vector<8x64xf32>
    %31 = arith.addf %28, %30 : vector<8x64xf32>
    %c3 = arith.constant 3 : index
    %c0_14 = arith.constant 0 : index
    %32 = vector.load %arg3[%c3, %c0_14] : memref<4x64xf32, #tpu.memory_space<vmem>>, vector<1x1xf32>
    %cst_15 = arith.constant 0.000000e+00 : f32
    %33 = vector.broadcast %cst_15 : f32 to vector<8x64xf32>
    %34 = arith.cmpf oge, %31, %33 : vector<8x64xf32>
    %35 = vector.broadcast %32 : vector<1x1xf32> to vector<8x64xf32>
    %36 = arith.mulf %35, %31 : vector<8x64xf32>
    %37 = arith.select %34, %31, %36 : vector<8x64xi1>, vector<8x64xf32>
    %c0_16 = arith.constant 0 : index
    %c0_17 = arith.constant 0 : index
    %38 = vector.load %arg4[%c0_16, %c0_17] : memref<64x32xbf16, #tpu.memory_space<vmem>>, vector<64x32xbf16>
    %39 = arith.truncf %37 : vector<8x64xf32> to vector<8x64xbf16>
    %cst_18 = arith.constant dense<0.000000e+00> : vector<8x32xf32>
    %40 = tpu.matmul %39, %38, %cst_18 {dimension_numbers = #tpu.dot_dimension_numbers<[1], [0], [0], [1], [0, 0, 1, 1], [], []>} : vector<8x64xbf16>, vector<64x32xbf16>, vector<8x32xf32> -> vector<8x32xf32>
    %c0_19 = arith.constant 0 : index
    %c0_20 = arith.constant 0 : index
    %41 = vector.load %arg5[%c0_19, %c0_20] : memref<1x32xf32, #tpu.memory_space<vmem>>, vector<1x32xf32>
    %42 = vector.broadcast %41 : vector<1x32xf32> to vector<8x32xf32>
    %43 = arith.addf %40, %42 : vector<8x32xf32>
    %c0_21 = arith.constant 0 : index
    %c0_22 = arith.constant 0 : index
    %44 = vector.load %arg6[%c0_21, %c0_22] : memref<8x32xf32, #tpu.memory_space<vmem>>, vector<8x32xf32>
    tpu.vector_store %arg6[%c0_21, %c0_22], %43 {strides = array<i32>} : memref<8x32xf32, #tpu.memory_space<vmem>>, vector<8x32xf32>,
    return
  }
  func.func @transform_0(%arg0: i32) -> (i32, i32) {
    %c0_i32 = arith.constant 0 : i32
    %c0_i32_0 = arith.constant 0 : i32
    return %arg0, %c0_i32 : i32, i32
  }
  func.func @transform_1(%arg0: i32) -> (i32, i32) {
    %c0_i32 = arith.constant 0 : i32
    %c0_i32_0 = arith.constant 0 : i32
    %c0_i32_1 = arith.constant 0 : i32
    return %c0_i32, %c0_i32_0 : i32, i32
  }
  func.func @transform_2(%arg0: i32) -> (i32, i32) {
    %c0_i32 = arith.constant 0 : i32
    %c0_i32_0 = arith.constant 0 : i32
    %c0_i32_1 = arith.constant 0 : i32
    return %c0_i32, %c0_i32_0 : i32, i32
  }
  func.func @transform_3(%arg0: i32) -> (i32, i32) {
    %c0_i32 = arith.constant 0 : i32
    %c0_i32_0 = arith.constant 0 : i32
    %c0_i32_1 = arith.constant 0 : i32
    return %c0_i32, %c0_i32_0 : i32, i32
  }
  func.func @transform_4(%arg0: i32) -> (i32, i32) {
    %c0_i32 = arith.constant 0 : i32
    %c0_i32_0 = arith.constant 0 : i32
    %c0_i32_1 = arith.constant 0 : i32
    return %c0_i32, %c0_i32_0 : i32, i32
  }
  func.func @transform_5(%arg0: i32) -> (i32, i32) {
    %c0_i32 = arith.constant 0 : i32
    %c0_i32_0 = arith.constant 0 : i32
    return %arg0, %c0_i32 : i32, i32
  }
}

</mosaic_0001>

<bundles_post_ra>
// kernel: tpu_custom_call.1
= control target key start
LH: loop header
LB: loop body
LE: loop exit
PB: predicated region body
PF: predicated region fallthrough
CT: control target
= control target key end

     0   :  { %v510_v1 = vmov 0.0   ;;  %vm511_vm0 = vmmov 0   ;;  %v512_v4 = vmov 1.0   ;;  %s619_s0 = inlined_call_operand.vmem [shape: f32[8,32], index: 0, kind: input, shape index: {}]   ;;  %s620_s1 = inlined_call_operand.vmem [shape: bf16[32,64], index: 1, kind: input, shape index: {}]   ;;  %s621_s2 = inlined_call_operand.vmem [shape: f32[4,64], index: 2, kind: input, shape index: {}]   ;;  %s622_s3 = inlined_call_operand.vmem [shape: bf16[64,32], index: 3, kind: input, shape index: {}]   ;;  %s623_s4 = inlined_call_operand.vmem [shape: f32[1,32], index: 4, kind: input, shape index: {}]   ;;  %s624_s5 = inlined_call_operand.hbm [shape: f32[8,32], index: 5, kind: output, shape index: {}]  }
   0x1   :  { %v480_v0 = vld [vmem:[%s620_s1 + $0x8] sm:$0xff]   ;;  %414 = vmatprep.subr.bf16.mxu0 %v510_v1  ;;  %422 = vmatprep.subr.mxu1 %v510_v1  ;;  %v481_v2 = vld [vmem:[%s620_s1] sm:$0xff]  }
   0x2   :  { %415 = vmatpush3.bf16.msra.mxu0 %v480_v0  ;;  %418 = vmatprep.mubr.msk.bf16.mxu0 %vm511_vm0, %v510_v1  ;;  %v22_v3 = vld [vmem:[%s619_s0] sm:$0xff] }
   0x3   :  { %416 = vmatprep.subr.bf16.mxu0 %v510_v1  ;;  %423 = vmatpush3.msra.mxu1 %v512_v4  ;;  %v27_v5 = vpack.c.bf16 %v22_v3, %v22_v3 }
   0x4   :  { %424 = vmatprep.subr.mxu1 %v510_v1  ;;  %438 = vmatprep.mubr.msk.f32.mxu1 %vm511_vm0, %v510_v1 }
   0x5   :  { %425 = vmatpush3.msra.mxu1 %v512_v4 }
   0x6   :  { %10 = vsyncpa [#allocation3], 0  ;;  %417 = vmatpush3.bf16.msra.mxu0 %v481_v2  ;;  %vm45_vm1 = vcmask 261120   ;;  %426 = vmatprep.subr.mxu1 %v510_v1  ;;  %v374_v6 = vld [vmem:[%s621_s2] ss:$0 sm:$0xff]  ;;  %vm89_vm2 = vcmask 523264  }
   0x7   :  { %441 = vmatprep.subr.mxu0 %v510_v1  ;;  %427 = vmatpush3.msra.mxu1 %v512_v4  ;;  %v513_v13 = vmov 0   ;;  %v268_v14 = vld [vmem:[%s621_s2 + $0x3] sm:$0x1]  ;;  %v482_v15 = vld [vmem:[%s622_s3 + $0x18] sm:$0xff]   ;;  %v483_v26 = vld [vmem:[%s622_s3 + $0x10] sm:$0xff]   ;;  %s514_s15 = smov [#allocation2]  }
   0x8   :  { %428 = vmatprep.subr.mxu1 %v510_v1  ;;  %479 = vset.pattern.permute.xlu0 %v513_v13  ;;  %472 = vpush %v268_v14  ;;  %v484_v27 = vld [vmem:[%s622_s3 + $0x8] sm:$0xff]   ;;  %v485_v29 = vld [vmem:[%s622_s3] sm:$0xff]   ;;  %s366_s16 = sshll.u32 %s514_s15, 4  ;;  %s367_s16 = int_to_ptr.vmem [resolvable:$true] %s366_s16 }
   0x9   :  { %419 = vmatmul.mubr.msk.bf16.vlgmr.msra.gmra.mxu0 %vm45_vm1, %v27_v5  ;;  %429 = vmatpush3.msra.mxu1 %v512_v4  ;;  %v380_v32 = vld [vmem:[%s621_s2 + $0x1] ss:$0 sm:$0xff]  ;;  %v381_v35 = vld [vmem:[%s621_s2 + $0x2] ss:$0 sm:$0xff]  ;;  %v382_v42 = vld [vmem:[%s623_s4] ss:$0 sm:$0xff]  ;;  %p493_p1 = scmp.lt.s32.totalorder %s367_s16, %s367_s16 }
   0xa   :  { %442 = vmatpush3.msra.mxu0 %v512_v4  ;;  %430 = vmatprep.subr.mxu1 %v510_v1  ;;  %s488_s2 = scalar_lea.vmem %s367_s16, 128 }
   0xb   :  { %443 = vmatprep.subr.mxu0 %v510_v1  ;;  %431 = vmatpush3.msra.mxu1 %v512_v4  ;;  %p489_p0 = scmp.ne.s32.totalorder %s367_s16, %s488_s2  ;;  %p494_p2 = scmp.lt.s32.totalorder %s488_s2, %s488_s2 }
   0xc   :  { %444 = vmatpush3.msra.mxu0 %v512_v4  ;;  %432 = vmatprep.subr.mxu1 %v510_v1 }
   0xd   :  { %445 = vmatprep.subr.mxu0 %v510_v1  ;;  %433 = vmatpush3.msra.mxu1 %v512_v4  ;;  %p495_p3 = por %p494_p2, %p493_p1 }
   0xe   :  { %446 = vmatpush3.msra.mxu0 %v512_v4  ;;  %434 = vmatprep.subr.mxu1 %v510_v1 }
   0xf   :  { %447 = vmatprep.subr.mxu0 %v510_v1  ;;  %435 = vmatpush3.msra.mxu1 %v512_v4  ;;  %p496_p4 = pnand %p495_p3, %p489_p0 }
  0x10   :  { %448 = vmatpush3.msra.mxu0 %v512_v4  ;;  %436 = vmatprep.subr.mxu1 %v510_v1 }
  0x11   :  { %449 = vmatprep.subr.mxu0 %v510_v1  ;;  %437 = vmatpush3.msra.mxu1 %v512_v4 }
  0x12   :  { %450 = vmatpush3.msra.mxu0 %v512_v4  ;;  %457 = vmatprep.mubr.msk.f32.mxu0 %vm511_vm0, %v510_v1 }
  0x13   :  { %451 = vmatprep.subr.mxu0 %v510_v1  ;;  %460 = vmatprep.subr.bf16.mxu1 %v510_v1 }
  0x14   :  { %452 = vmatpush3.msra.mxu0 %v512_v4 }
  0x15   :  { %453 = vmatprep.subr.mxu0 %v510_v1 }
  0x16   :  { %454 = vmatpush3.msra.mxu0 %v512_v4 }
  0x17   :  { %455 = vmatprep.subr.mxu0 %v510_v1 }
  0x18   :  { %456 = vmatpush3.msra.mxu0 %v512_v4 }
  0x39   :  { %s473_s11 = spop %472 }
  0x3a   :  { %v272_v37 = vstv %s473_s11 }
  0xc9   :  { %v83_v7 = vpop.f32.mrf.mxu0 }
  0xca   :  { %v84_v8 = vadd.f32 %v374_v6, %v83_v7 }
  0xcb   :  { %v420_v9 = vpop.f32.mrf.mxu0 }
  0xcc   :  { %v163_v10 = vmul.f32 %v84_v8, %v84_v8  ;;  %439 = vmatmul.mubr.msk.f32.vlgmr.msra.gmra.mxu1 %vm89_vm2, %v84_v8 }
  0xcd   :  { %v86_v11 = vpop.f32.mrf.mxu0  ;;  %468 = vmatprep.mubr.msk.bf16.mxu1 %vm511_vm0, %v510_v1  ;;  %461 = vmatpush3.bf16.msra.mxu1 %v482_v15 }
  0xce   :  { %458 = vmatmul.mubr.msk.f32.vlgmr.msra.gmra.mxu0 %vm89_vm2, %v163_v10  ;;  %462 = vmatprep.subr.bf16.mxu1 %v510_v1 }
  0xcf   :  { %v421_v12 = vpop.f32.mrf.mxu0 }
  0xd1   :  { %463 = vmatpush3.bf16.msra.mxu1 %v483_v26 }
  0xd2   :  { %464 = vmatprep.subr.bf16.mxu1 %v510_v1 }
  0xd5   :  { %465 = vmatpush3.bf16.msra.mxu1 %v484_v27 }
  0xd6   :  { %466 = vmatprep.subr.bf16.mxu1 %v510_v1 }
  0xd9   :  { %467 = vmatpush3.bf16.msra.mxu1 %v485_v29 }
 0x18c   :  { %v159_v16 = vpop.f32.mrf.mxu1 }
 0x18d   :  { %v237_v17 = vmul.f32 0.015625, %v159_v16 }
 0x18e   :  { %v440_v18 = vpop.f32.mrf.mxu1  ;;  %v233_v19 = vpop.f32.mrf.mxu0 }
 0x18f   :  { %v239_v20 = vmul.f32 %v237_v17, %v237_v17  ;;  %v238_v21 = vmul.f32 0.015625, %v233_v19  ;;  %244 = vperm.xlu0 %479, %v237_v17  }
 0x190   :  { %v459_v22 = vpop.f32.mrf.mxu0 }
 0x191   :  { %v240_v23 = vsub.f32 %v238_v21, %v239_v20 }
 0x193   :  { %v241_v24 = vmax.f32 %v240_v23, 0.0 }
 0x195   :  { %v248_v25 = vadd.f32 1e-05, %v241_v24 }
 0x197   :  { %486 = vrsqrt.f32 %v248_v25 }
 0x1a4   :  { %v487_v28 = vpop.eup %486 }
 0x1a5   :  { %252 = vperm.xlu0 %479, %v487_v28  }
 0x20a   :  { %v245_v30 = vpop.permute.xlu0 %244 }
 0x20b   :  { %v247_v31 = vsub.f32 %v84_v8, %v245_v30 }
 0x220   :  { %v253_v33 = vpop.permute.xlu0 %252 }
 0x221   :  { %v255_v34 = vmul.f32 %v253_v33, %v247_v31 }
 0x223   :  { %v261_v36 = vmul.f32 %v380_v32, %v255_v34 }
 0x225   :  { %v267_v38 = vadd.f32 %v381_v35, %v261_v36 }
 0x227   :  { %vm269_vm3 = vcmp.ge.f32.partialorder %v267_v38, 0.0  ;;  %v274_v39 = vmul.f32 %v272_v37, %v267_v38 }
 0x229   :  { %v275_v40 = vsel %vm269_vm3, %v267_v38, %v274_v39 }
 0x22a   :  { %v284_v41 = vpack.c.bf16 %v275_v40, %v275_v40 }
 0x22c   :  { %469 = vmatmul.mubr.msk.bf16.vlgmr.msra.gmra.mxu1 %vm89_vm2, %v284_v41 }
 0x2ec   :  { %v353_v43 = vpop.f32.mrf.mxu1 }
 0x2ed   :  { %v354_v44 = vadd.f32 %v382_v42, %v353_v43 }
 0x2ee   :  { %v470_v45 = vpop.f32.mrf.mxu1 }
 0x2ef   :  { %359 = vst.msk [vmem:[#allocation2] sm:$0xff] %vm45_vm1, %v354_v44 }
 0x2f0   :  { %v356_v46 = vpop.f32.mrf.mxu1 }
 0x2f1   :  { %499 = shalt.err (!%p496_p4)
}
 0x2f2   :  { %369 = dma.vmem_to_hbm [thread:$0]  %s367_s16, 128, %s624_s5, [#allocation3]   ;;  %v471_v47 = vpop.f32.mrf.mxu1 }
 0x2f3   :  { %508 = dma.done.wait [#allocation3], 128  }
 0x2f4   :  { %509 = vsyncadd [#allocation3], 4294967168 }
 0x2f5   :  { %373 = vsyncpa [#allocation3], 1 }

</bundles_post_ra>
